<compile_context>
chip_gen: v5e
topology: v5e:2x2
jax: 0.10.0
libtpu: 0.0.40
codegen_flags: <defaults>
</compile_context>

<pallas_src>
import jax
import jax.numpy as jnp
from jax.experimental import pallas as pl
from jax.experimental.pallas import tpu as pltpu


def _round_up(x, m):
    return ((x + m - 1) // m) * m


def encoder_kernel(x_ref, w1_ref, b1_ref, w2_ref, b2_ref, o_ref, h_acc):
    # x_ref : [TILE_B, TILE_D]   (pipelined over batch and K grid axes)
    # w1_ref: [TILE_D, H1]       (pipelined over K, resident over batch)
    # b1_ref: [1, H1]            f32, resident
    # w2_ref: [H1, L_pad]        resident, L_pad % 128 == 0 (lane-dense)
    # b2_ref: [1, L_pad]         f32, resident
    # o_ref : [TILE_B, L_pad]    f32, lane-dense unmasked store
    # h_acc : [TILE_B, H1]       f32 VMEM accumulator (persists across K steps)
    k = pl.program_id(1)

    @pl.when(k == 0)
    def _():
        h_acc[...] = jnp.zeros_like(h_acc)

    # First GEMM: accumulate x @ w1 in f32 on the MXU.
    h_acc[...] += jnp.dot(x_ref[...], w1_ref[...],
                          preferred_element_type=jnp.float32)

    @pl.when(k == pl.num_programs(1) - 1)
    def _():
        # Bias + ReLU in f32; second GEMM with operands narrowed to w2's dtype
        # for the MXU (f32 accumulation); bias add + store in f32.
        h = jnp.maximum(h_acc[...] + b1_ref[...], 0.0)
        out = jnp.dot(h.astype(w2_ref.dtype), w2_ref[...],
                      preferred_element_type=jnp.float32)
        o_ref[...] = (out + b2_ref[...]).astype(o_ref.dtype)


def encoder_forward(x, w1, b1, w2, b2, *,
                    compute_dtype=jnp.bfloat16,
                    max_tile_b=1024,
                    vmem_budget_bytes=40 * 1024 * 1024):
    """Fused flatten -> linear1 -> ReLU -> linear2.

    x : [B, C, H, W] (NCHW, as in PyTorch); w1: [D_in, H1], b1: [H1],
    w2: [H1, L], b2: [L].  Returns [B, L] in x.dtype.
    """
    B = x.shape[0]
    x_flat = x.reshape(B, -1)                 # torch.flatten(x, 1)
    D_in, H1 = w1.shape
    L = w2.shape[1]
    assert x_flat.shape[1] == D_in

    result_dtype = x.dtype
    dt_in = jnp.dtype(compute_dtype).itemsize
    dt_out = jnp.dtype(result_dtype).itemsize

    # Lane-dense output: pad the narrow latent dim to a multiple of 128 so the
    # store path is full-width vst (weights are tiny, the pad is free).
    L_pad = _round_up(L, 128)
    if L_pad != L:
        w2 = jnp.pad(w2, ((0, 0), (0, L_pad - L)))
        b2 = jnp.pad(b2, (0, L_pad - L))

    # Cast MXU operands (no-op when already compute_dtype).
    # TODO(synk): in a real pipeline emit x in bf16 from the producer so this
    # cast fuses upstream instead of costing a standalone pass over x.
    x_flat = x_flat.astype(compute_dtype)
    w1 = w1.astype(compute_dtype)
    w2 = w2.astype(compute_dtype)
    b1_2d = b1.reshape(1, H1).astype(jnp.float32)
    b2_2d = b2.reshape(1, L_pad).astype(jnp.float32)

    # --- VMEM accounting (per TensorCore). Pallas double-buffers every input
    # block, even constant-index ones, so count x2 for the weights too.
    def vmem_needed(tile_b, tile_d):
        w = 2 * (tile_d * H1 + H1 * L_pad) * dt_in + 2 * (H1 + L_pad) * 4
        xb = 2 * tile_b * tile_d * dt_in
        ob = 2 * tile_b * L_pad * dt_out
        acc = tile_b * H1 * 4
        return w + xb + ob + acc

    # --- K (D_in) tile: single resident w1 block unless it blows the budget.
    # Halving keeps tile_d a multiple of 128 and an exact divisor of D_in, so
    # no partial (garbage) K block ever reaches the accumulator.
    tile_d = D_in
    while vmem_needed(8, tile_d) > vmem_budget_bytes and tile_d % 256 == 0:
        tile_d //= 2

    # --- Batch tile: biggest multiple of 8 under the budget, capped by batch.
    b_ceil8 = _round_up(B, 8)
    tile_b = max(8, (min(max_tile_b, b_ceil8) // 8) * 8)
    while tile_b > 8 and vmem_needed(tile_b, tile_d) > vmem_budget_bytes:
        tile_b //= 2
    tile_b = max(8, (tile_b // 8) * 8)
    # v7x megacore: guarantee >=2 batch grid steps so the "parallel" axis can
    # shard across both TensorCores (no-op for tiny batches; negligible extra
    # per-step overhead on single-TC v5e/v6e).
    if b_ceil8 >= 16:
        tile_b = min(tile_b, max(8, ((b_ceil8 // 2) // 8) * 8))

    n_b = pl.cdiv(B, tile_b)
    n_k = pl.cdiv(D_in, tile_d)
    # Only the (tiny) output is padded; x is NOT copied -- the ragged last
    # batch tile is a partial read handled by Pallas block bounds.
    B_pad = n_b * tile_b

    # Explicit VMEM limit with headroom, capped below v7x's 64 MiB/TC.
    vmem_limit = min(
        max(int(vmem_needed(tile_b, tile_d) * 1.25) + (1 << 20), 4 << 20),
        56 << 20)

    flops = 2 * B * D_in * H1 + 2 * B * H1 * L_pad
    bytes_accessed = (B * D_in * dt_in
                      + (D_in * H1 + H1 * L_pad) * dt_in
                      + (H1 + L_pad) * 4
                      + B_pad * L_pad * dt_out)

    out_padded = pl.pallas_call(
        encoder_kernel,
        out_shape=jax.ShapeDtypeStruct((B_pad, L_pad), result_dtype),
        grid_spec=pltpu.PrefetchScalarGridSpec(
            num_scalar_prefetch=0,
            grid=(n_b, n_k),
            in_specs=[
                pl.BlockSpec((tile_b, tile_d), lambda i, k: (i, k)),  # x tile
                pl.BlockSpec((tile_d, H1), lambda i, k: (k, 0)),      # w1
                pl.BlockSpec((1, H1), lambda i, k: (0, 0)),           # b1
                pl.BlockSpec((H1, L_pad), lambda i, k: (0, 0)),       # w2
                pl.BlockSpec((1, L_pad), lambda i, k: (0, 0)),        # b2
            ],
            out_specs=pl.BlockSpec((tile_b, L_pad), lambda i, k: (i, 0)),
            scratch_shapes=[pltpu.VMEM((tile_b, H1), jnp.float32)],
        ),
        compiler_params=pltpu.CompilerParams(
            dimension_semantics=("parallel", "arbitrary"),
            vmem_limit_bytes=vmem_limit,
        ),
        cost_estimate=pl.CostEstimate(
            flops=flops, transcendentals=0, bytes_accessed=bytes_accessed),
    )(x_flat, w1, b1_2d, w2, b2_2d)

    # NOTE: for tiny batches (grid == 1 step) a plain fused-XLA path would be
    # lower latency; kept on the Pallas path here so the kernel is exercised.
    return out_padded[:B, :L]


def reference_forward(x, w1, b1, w2, b2, compute_dtype=jnp.bfloat16):
    """Pure-JAX reference mirroring the kernel's dtype policy."""
    B = x.shape[0]
    xf = x.reshape(B, -1).astype(compute_dtype)
    h = jnp.dot(xf, w1.astype(compute_dtype),
                preferred_element_type=jnp.float32)
    h = jnp.maximum(h + b1.astype(jnp.float32), 0.0)
    out = jnp.dot(h.astype(compute_dtype), w2.astype(compute_dtype),
                  preferred_element_type=jnp.float32)
    return out + b2.astype(jnp.float32)


if __name__ == "__main__":
    # Small shapes consistent with the module's forward:
    #   input x: [2, 4, 16, 16]  -> input_dims = 4*16*16 = 1024
    #   h1_dims = 128, latent_dims = 32
    B, C, H, W = 2, 4, 16, 16
    input_dims = C * H * W
    h1_dims = 128
    latent_dims = 32

    key = jax.random.PRNGKey(0)
    kx, kw1, kb1, kw2, kb2 = jax.random.split(key, 5)

    x = jax.random.normal(kx, (B, C, H, W), dtype=jnp.float32)

    # Deterministic parameter init (uniform, PyTorch-Linear-like scale).
    # Stored pre-transposed as [in, out] so the kernel does plain x @ W.
    bound1 = 1.0 / (input_dims ** 0.5)
    bound2 = 1.0 / (h1_dims ** 0.5)
    w1 = jax.random.uniform(kw1, (input_dims, h1_dims), jnp.float32, -bound1, bound1)
    b1 = jax.random.uniform(kb1, (h1_dims,), jnp.float32, -bound1, bound1)
    w2 = jax.random.uniform(kw2, (h1_dims, latent_dims), jnp.float32, -bound2, bound2)
    b2 = jax.random.uniform(kb2, (latent_dims,), jnp.float32, -bound2, bound2)

    out = encoder_forward(x, w1, b1, w2, b2)
    out = jax.block_until_ready(out)

    ref = reference_forward(x, w1, b1, w2, b2)
    assert out.shape == (B, latent_dims)
    # bf16 MXU operands -> compare against the dtype-mirrored reference with a
    # tolerance that covers accumulation-order differences.
    assert jnp.allclose(out, ref, atol=1e-2, rtol=1e-2)

    print("KERNEL_OK")
</pallas_src>

<mosaic_0001>
module attributes {stable_mosaic.version = 11 : i64} {
  func.func @encoder_kernel(%arg0: i32, %arg1: i32, %arg2: memref<8x1024xbf16, #tpu.memory_space<vmem>>, %arg3: memref<1024x128xbf16, #tpu.memory_space<vmem>>, %arg4: memref<1x128xf32, #tpu.memory_space<vmem>>, %arg5: memref<128x128xbf16, #tpu.memory_space<vmem>>, %arg6: memref<1x128xf32, #tpu.memory_space<vmem>>, %arg7: memref<8x128xf32, #tpu.memory_space<vmem>>, %arg8: memref<8x128xf32, #tpu.memory_space<vmem>>) attributes {dimension_semantics = [#tpu.dimension_semantics<parallel>, #tpu.dimension_semantics<arbitrary>], iteration_bounds = array<i64: 1, 1>, scalar_prefetch = 0 : i64, scratch_operands = 1 : i64, tpu.core_type = #tpu.core_type<tc>, window_params = [{transform_indices = @transform_0, window_bounds = array<i64: 8, 1024>}, {transform_indices = @transform_1, window_bounds = array<i64: 1024, 128>}, {pipeline_mode = #tpu.pipeline_mode<synchronous>, transform_indices = @transform_2, window_bounds = array<i64: 1, 128>}, {pipeline_mode = #tpu.pipeline_mode<synchronous>, transform_indices = @transform_3, window_bounds = array<i64: 128, 128>}, {pipeline_mode = #tpu.pipeline_mode<synchronous>, transform_indices = @transform_4, window_bounds = array<i64: 1, 128>}, {transform_indices = @transform_5, window_bounds = array<i64: 8, 128>}]} {
    %c0_i32 = arith.constant 0 : i32
    %0 = arith.cmpi eq, %arg1, %c0_i32 : i32
    %1 = arith.extui %0 : i1 to i32
    %c0_i32_0 = arith.constant 0 : i32
    %2 = arith.cmpi ne, %1, %c0_i32_0 : i32
    scf.if %2 {
      %cst_10 = arith.constant 0.000000e+00 : f32
      %12 = vector.broadcast %cst_10 : f32 to vector<8x128xf32>
      %c0_11 = arith.constant 0 : index
      %c0_12 = arith.constant 0 : index
      %13 = vector.load %arg8[%c0_11, %c0_12] : memref<8x128xf32, #tpu.memory_space<vmem>>, vector<8x128xf32>
      tpu.vector_store %arg8[%c0_11, %c0_12], %12 {strides = array<i32>} : memref<8x128xf32, #tpu.memory_space<vmem>>, vector<8x128xf32>,
    } else {
    }
    %c0 = arith.constant 0 : index
    %c0_1 = arith.constant 0 : index
    %3 = vector.load %arg8[%c0, %c0_1] : memref<8x128xf32, #tpu.memory_space<vmem>>, vector<8x128xf32>
    %c0_2 = arith.constant 0 : index
    %c0_3 = arith.constant 0 : index
    %4 = vector.load %arg2[%c0_2, %c0_3] : memref<8x1024xbf16, #tpu.memory_space<vmem>>, vector<8x1024xbf16>
    %c0_4 = arith.constant 0 : index
    %c0_5 = arith.constant 0 : index
    %5 = vector.load %arg3[%c0_4, %c0_5] : memref<1024x128xbf16, #tpu.memory_space<vmem>>, vector<1024x128xbf16>
    %cst = arith.constant dense<0.000000e+00> : vector<8x128xf32>
    %6 = tpu.matmul %4, %5, %cst {dimension_numbers = #tpu.dot_dimension_numbers<[1], [0], [0], [1], [0, 0, 1, 1], [], []>} : vector<8x1024xbf16>, vector<1024x128xbf16>, vector<8x128xf32> -> vector<8x128xf32>
    %7 = arith.addf %3, %6 : vector<8x128xf32>
    %c0_6 = arith.constant 0 : index
    %c0_7 = arith.constant 0 : index
    %8 = vector.load %arg8[%c0_6, %c0_7] : memref<8x128xf32, #tpu.memory_space<vmem>>, vector<8x128xf32>
    tpu.vector_store %arg8[%c0_6, %c0_7], %7 {strides = array<i32>} : memref<8x128xf32, #tpu.memory_space<vmem>>, vector<8x128xf32>,
    %c0_i32_8 = arith.constant 0 : i32
    %9 = arith.cmpi eq, %arg1, %c0_i32_8 : i32
    %10 = arith.extui %9 : i1 to i32
    %c0_i32_9 = arith.constant 0 : i32
    %11 = arith.cmpi ne, %10, %c0_i32_9 : i32
    scf.if %11 {
      %c0_10 = arith.constant 0 : index
      %c0_11 = arith.constant 0 : index
      %12 = vector.load %arg8[%c0_10, %c0_11] : memref<8x128xf32, #tpu.memory_space<vmem>>, vector<8x128xf32>
      %c0_12 = arith.constant 0 : index
      %c0_13 = arith.constant 0 : index
      %13 = vector.load %arg4[%c0_12, %c0_13] : memref<1x128xf32, #tpu.memory_space<vmem>>, vector<1x128xf32>
      %14 = vector.broadcast %13 : vector<1x128xf32> to vector<8x128xf32>
      %15 = arith.addf %12, %14 : vector<8x128xf32>
      %cst_14 = arith.constant 0.000000e+00 : f32
      %16 = vector.broadcast %cst_14 : f32 to vector<8x128xf32>
      %17 = arith.maximumf %15, %16 : vector<8x128xf32>
      %18 = arith.truncf %17 : vector<8x128xf32> to vector<8x128xbf16>
      %c0_15 = arith.constant 0 : index
      %c0_16 = arith.constant 0 : index
      %19 = vector.load %arg5[%c0_15, %c0_16] : memref<128x128xbf16, #tpu.memory_space<vmem>>, vector<128x128xbf16>
      %cst_17 = arith.constant dense<0.000000e+00> : vector<8x128xf32>
      %20 = tpu.matmul %18, %19, %cst_17 {dimension_numbers = #tpu.dot_dimension_numbers<[1], [0], [0], [1], [0, 0, 1, 1], [], []>} : vector<8x128xbf16>, vector<128x128xbf16>, vector<8x128xf32> -> vector<8x128xf32>
      %c0_18 = arith.constant 0 : index
      %c0_19 = arith.constant 0 : index
      %21 = vector.load %arg6[%c0_18, %c0_19] : memref<1x128xf32, #tpu.memory_space<vmem>>, vector<1x128xf32>
      %22 = vector.broadcast %21 : vector<1x128xf32> to vector<8x128xf32>
      %23 = arith.addf %20, %22 : vector<8x128xf32>
      %c0_20 = arith.constant 0 : index
      %c0_21 = arith.constant 0 : index
      %24 = vector.load %arg7[%c0_20, %c0_21] : memref<8x128xf32, #tpu.memory_space<vmem>>, vector<8x128xf32>
      tpu.vector_store %arg7[%c0_20, %c0_21], %23 {strides = array<i32>} : memref<8x128xf32, #tpu.memory_space<vmem>>, vector<8x128xf32>,
    } else {
    }
    return
  }
  func.func @transform_0(%arg0: i32, %arg1: i32) -> (i32, i32) {
    %c0_i32 = arith.constant 0 : i32
    return %arg0, %arg1 : i32, i32
  }
  func.func @transform_1(%arg0: i32, %arg1: i32) -> (i32, i32) {
    %c0_i32 = arith.constant 0 : i32
    %c0_i32_0 = arith.constant 0 : i32
    return %arg1, %c0_i32 : i32, i32
  }
  func.func @transform_2(%arg0: i32, %arg1: i32) -> (i32, i32) {
    %c0_i32 = arith.constant 0 : i32
    %c0_i32_0 = arith.constant 0 : i32
    %c0_i32_1 = arith.constant 0 : i32
    return %c0_i32, %c0_i32_0 : i32, i32
  }
  func.func @transform_3(%arg0: i32, %arg1: i32) -> (i32, i32) {
    %c0_i32 = arith.constant 0 : i32
    %c0_i32_0 = arith.constant 0 : i32
    %c0_i32_1 = arith.constant 0 : i32
    return %c0_i32, %c0_i32_0 : i32, i32
  }
  func.func @transform_4(%arg0: i32, %arg1: i32) -> (i32, i32) {
    %c0_i32 = arith.constant 0 : i32
    %c0_i32_0 = arith.constant 0 : i32
    %c0_i32_1 = arith.constant 0 : i32
    return %c0_i32, %c0_i32_0 : i32, i32
  }
  func.func @transform_5(%arg0: i32, %arg1: i32) -> (i32, i32) {
    %c0_i32 = arith.constant 0 : i32
    %c0_i32_0 = arith.constant 0 : i32
    return %arg0, %c0_i32 : i32, i32
  }
}

</mosaic_0001>

<bundles_post_ra>
// kernel: tpu_custom_call.1
= control target key start
LH: loop header
LB: loop body
LE: loop exit
PB: predicated region body
PF: predicated region fallthrough
CT: control target
= control target key end

     0   :  { %10 = vsyncpa [#allocation4], 0  ;;  %s1362_s0 = inlined_call_operand.hbm [shape: bf16[2,1024], index: 0, kind: input, shape index: {}]   ;;  %s1363_s1 = inlined_call_operand.hbm [shape: bf16[1024,128], index: 1, kind: input, shape index: {}]   ;;  %s1364_s2 = inlined_call_operand.vmem [shape: f32[1,128], index: 2, kind: input, shape index: {}]   ;;  %s1365_s3 = inlined_call_operand.hbm [shape: bf16[128,128], index: 3, kind: input, shape index: {}]   ;;  %s1366_s4 = inlined_call_operand.vmem [shape: f32[1,128], index: 4, kind: input, shape index: {}]   ;;  %s1367_s5 = inlined_call_operand.hbm [shape: f32[8,128], index: 5, kind: output, shape index: {}]  }
   0x1   :  { %11 = vsyncpa [#allocation7], 0 }
   0x2   :  { %12 = vsyncpa [#allocation5], 0  ;;  %s30_s20 = sshll.u32 %s1363_s1, 4  ;;  %s31_s20 = int_to_ptr.hbm [resolvable:$true] %s30_s20 }
   0x3   :  { %16 = vsyncadd [#allocation4], 384  ;;  %s1306_s21 = smov [#allocation6]   ;;  %s17_s25 = sshll.u32 %s1362_s0, 4  ;;  %s18_s25 = int_to_ptr.hbm [resolvable:$true] %s17_s25 }
   0x4   :  { %s32_s22 = sshll.u32 %s1306_s21, 4  ;;  %s1307_s26 = smov 64   ;;  %s33_s22 = int_to_ptr.vmem [resolvable:$true] %s32_s22 }
   0x5   :  { %s1308_s27 = smov 4   ;;  %s1309_s28 = smov [#allocation3]  }
   0x6   :  { %38 = dma.hbm_to_vmem [thread:$0]  %s31_s20, 8192, %s33_s22, [#allocation7], %s1307_s26, %s1307_s26, %s1308_s27  }
   0x7   :  { %s19_s29 = sshll.u32 %s1309_s28, 4  ;;  %s1310_s30 = smov 128   ;;  %s20_s29 = int_to_ptr.vmem [resolvable:$true] %s19_s29 }
   0x8   :  { %s1311_s6 = smov 8   ;;  %s45_s8 = sshll.u32 %s1365_s3, 4  ;;  %s46_s8 = int_to_ptr.hbm [resolvable:$true] %s45_s8 }
   0x9   :  { %25 = dma.hbm_to_vmem [thread:$0]  %s18_s25, 128, %s20_s29, [#allocation4], %s1310_s30, %s1310_s30, %s1311_s6  }
   0xa   :  { %s1312_s9 = smov [#allocation8]  }
   0xb   :  { %s47_s10 = sshll.u32 %s1312_s9, 4  ;;  %s48_s10 = int_to_ptr.vmem [resolvable:$true] %s47_s10 }
   0xc   :  { %53 = dma.hbm_to_vmem [thread:$0]  %s46_s8, 1024, %s48_s10, [#allocation7], %s1307_s26, %s1307_s26, %s1308_s27  }
   0xd   :  { %1300 = dma.done.wait [#allocation4], 512  }
   0xe   :  { %1301 = vsyncadd [#allocation4], 4294966784 }
   0xf   :  { %1302 = dma.done.wait [#allocation7], 9216  }
  0x10   :  { %1303 = vsyncadd [#allocation7], 4294958080  ;;  %v1129_v0 = vld [vmem:[#allocation6 + $0x38] sm:$0xff]  ;;  %v1128_v4 = vld [vmem:[#allocation6 + $0x30] sm:$0xff]  ;;  %s1313_s13 = smov [#allocation9]   ;;  %s823_s17 = sshll.u32 %s1367_s5, 4  ;;  %s824_s17 = int_to_ptr.hbm [resolvable:$true] %s823_s17 }
  0x11   :  { %v1137_v1 = vld [vmem:[#allocation6 + $0x78] sm:$0xff]  ;;  %617 = vmatpush.bf16.msra.mxu0 %v1129_v0  ;;  %v1136_v5 = vld [vmem:[#allocation6 + $0x70] sm:$0xff]  ;;  %v1127_v8 = vld [vmem:[#allocation6 + $0x28] sm:$0xff]  ;;  %s821_s14 = sshll.u32 %s1313_s13, 4  ;;  %s822_s14 = int_to_ptr.vmem [resolvable:$true] %s821_s14 }
  0x12   :  { %v1145_v2 = vld [vmem:[#allocation6 + $0xb8] sm:$0xff]  ;;  %630 = vmatpush.bf16.msra.mxu1 %v1137_v1  ;;  %v1144_v6 = vld [vmem:[#allocation6 + $0xb0] sm:$0xff]  ;;  %v1135_v9 = vld [vmem:[#allocation6 + $0x68] sm:$0xff] }
  0x13   :  { %v1153_v3 = vld [vmem:[#allocation6 + $0xf8] sm:$0xff]  ;;  %643 = vmatpush.bf16.msra.mxu2 %v1145_v2  ;;  %v1152_v7 = vld [vmem:[#allocation6 + $0xf0] sm:$0xff]  ;;  %v1143_v10 = vld [vmem:[#allocation6 + $0xa8] sm:$0xff] }
  0x14   :  { %656 = vmatpush.bf16.msra.mxu3 %v1153_v3  ;;  %v1151_v11 = vld [vmem:[#allocation6 + $0xe8] sm:$0xff]  ;;  %v1126_v12 = vld [vmem:[#allocation6 + $0x20] sm:$0xff]  ;;  %v1125_v16 = vld [vmem:[#allocation6 + $0x18] sm:$0xff] }
  0x15   :  { %618 = vmatpush.bf16.msra.mxu0 %v1128_v4  ;;  %v1134_v13 = vld [vmem:[#allocation6 + $0x60] sm:$0xff]  ;;  %v75_v18 = vld [vmem:[#allocation3 + $0x8] sm:$0xff]  ;;  %v1133_v19 = vld [vmem:[#allocation6 + $0x58] sm:$0xff] }
  0x16   :  { %631 = vmatpush.bf16.msra.mxu1 %v1136_v5  ;;  %v1142_v14 = vld [vmem:[#allocation6 + $0xa0] sm:$0xff]  ;;  %v76_v20 = vld [vmem:[#allocation3 + $0x10] sm:$0xff]  ;;  %v77_v21 = vld [vmem:[#allocation3 + $0x18] sm:$0xff]  ;;  %210 = vst [vmem:[#allocation1 + $0x1] ss:$9 sm:$0xff] %v75_v18 }
  0x17   :  { %644 = vmatpush.bf16.msra.mxu2 %v1144_v6  ;;  %v1150_v15 = vld [vmem:[#allocation6 + $0xe0] sm:$0xff]  ;;  %v1141_v22 = vld [vmem:[#allocation6 + $0x98] sm:$0xff]  ;;  %213 = vst [vmem:[#allocation1 + $0x2] ss:$9 sm:$0xff] %v76_v20  ;;  %v1124_v24 = vld [vmem:[#allocation6 + $0x10] sm:$0xff] }
  0x18   :  { %657 = vmatpush.bf16.msra.mxu3 %v1152_v7  ;;  %v74_v17 = vld [vmem:[#allocation3] sm:$0xff]  ;;  %v1149_v23 = vld [vmem:[#allocation6 + $0xd8] sm:$0xff]  ;;  %216 = vst [vmem:[#allocation1 + $0x3] ss:$9 sm:$0xff] %v77_v21  ;;  %v1132_v25 = vld [vmem:[#allocation6 + $0x50] sm:$0xff] }
  0x19   :  { %619 = vmatpush.bf16.msra.mxu0 %v1127_v8  ;;  %207 = vst [vmem:[#allocation1] ss:$9 sm:$0xff] %v74_v17  ;;  %v1140_v26 = vld [vmem:[#allocation6 + $0x90] sm:$0xff]  ;;  %v1123_v28 = vld [vmem:[#allocation6 + $0x8] sm:$0xff]  ;;  %v1122_v32 = vld [vmem:[#allocation6] sm:$0xff] }
  0x1a   :  { %632 = vmatpush.bf16.msra.mxu1 %v1135_v9  ;;  %v1148_v27 = vld [vmem:[#allocation6 + $0xd0] sm:$0xff]  ;;  %v1131_v29 = vld [vmem:[#allocation6 + $0x48] sm:$0xff]  ;;  %v1130_v33 = vld [vmem:[#allocation6 + $0x40] sm:$0xff] }
  0x1b   :  { %645 = vmatpush.bf16.msra.mxu2 %v1143_v10  ;;  %v1139_v30 = vld [vmem:[#allocation6 + $0x88] sm:$0xff]  ;;  %v1138_v34 = vld [vmem:[#allocation6 + $0x80] sm:$0xff]  ;;  %v1161_v36 = vld [vmem:[#allocation6 + $0x138] sm:$0xff] }
  0x1c   :  { %658 = vmatpush.bf16.msra.mxu3 %v1151_v11  ;;  %v1147_v31 = vld [vmem:[#allocation6 + $0xc8] sm:$0xff]  ;;  %v1146_v35 = vld [vmem:[#allocation6 + $0xc0] sm:$0xff]  ;;  %v1169_v37 = vld [vmem:[#allocation6 + $0x178] sm:$0xff] }
  0x1d   :  { %620 = vmatpush.bf16.msra.mxu0 %v1126_v12  ;;  %v1177_v38 = vld [vmem:[#allocation6 + $0x1b8] sm:$0xff]  ;;  %v1160_v40 = vld [vmem:[#allocation6 + $0x130] sm:$0xff]  ;;  %v1159_v48 = vld [vmem:[#allocation6 + $0x128] sm:$0xff] }
  0x1e   :  { %633 = vmatpush.bf16.msra.mxu1 %v1134_v13  ;;  %v1185_v39 = vld [vmem:[#allocation6 + $0x1f8] sm:$0xff]  ;;  %v1168_v43 = vld [vmem:[#allocation6 + $0x170] sm:$0xff]  ;;  %v1167_v49 = vld [vmem:[#allocation6 + $0x168] sm:$0xff] }
  0x1f   :  { %646 = vmatpush.bf16.msra.mxu2 %v1142_v14  ;;  %v1176_v46 = vld [vmem:[#allocation6 + $0x1b0] sm:$0xff]  ;;  %v1175_v50 = vld [vmem:[#allocation6 + $0x1a8] sm:$0xff]  ;;  %v1158_v52 = vld [vmem:[#allocation6 + $0x120] sm:$0xff] }
  0x20   :  { %659 = vmatpush.bf16.msra.mxu3 %v1150_v15  ;;  %v219_v41 = vld [vmem:[#allocation1 + $0x12] sm:$0xff]  ;;  %v217_v42 = vld [vmem:[#allocation1] sm:$0xff]  ;;  %v218_v45 = vld [vmem:[#allocation1 + $0x9] sm:$0xff] }
  0x21   :  { %621 = vmatpush.bf16.msra.mxu0 %v1125_v16  ;;  %v220_v44 = vld [vmem:[#allocation1 + $0x1b] sm:$0xff]  ;;  %v1183_v51 = vld [vmem:[#allocation6 + $0x1e8] sm:$0xff]  ;;  %v1166_v53 = vld [vmem:[#allocation6 + $0x160] sm:$0xff] }
  0x22   :  { %634 = vmatpush.bf16.msra.mxu1 %v1133_v19  ;;  %v1184_v47 = vld [vmem:[#allocation6 + $0x1f0] sm:$0xff]  ;;  %v1174_v54 = vld [vmem:[#allocation6 + $0x1a0] sm:$0xff]  ;;  %v1157_v56 = vld [vmem:[#allocation6 + $0x118] sm:$0xff] }
  0x23   :  { %647 = vmatpush.bf16.msra.mxu2 %v1141_v22  ;;  %v1182_v55 = vld [vmem:[#allocation6 + $0x1e0] sm:$0xff]  ;;  %v1165_v57 = vld [vmem:[#allocation6 + $0x158] sm:$0xff]  ;;  %v1156_v60 = vld [vmem:[#allocation6 + $0x110] sm:$0xff] }
  0x24   :  { %660 = vmatpush.bf16.msra.mxu3 %v1149_v23  ;;  %v1173_v58 = vld [vmem:[#allocation6 + $0x198] sm:$0xff]  ;;  %v1164_v61 = vld [vmem:[#allocation6 + $0x150] sm:$0xff]  ;;  %v1155_v0 = vld [vmem:[#allocation6 + $0x108] sm:$0xff] }
  0x25   :  { %622 = vmatpush.bf16.msra.mxu0 %v1124_v24  ;;  %v1181_v59 = vld [vmem:[#allocation6 + $0x1d8] sm:$0xff]  ;;  %v1172_v62 = vld [vmem:[#allocation6 + $0x190] sm:$0xff]  ;;  %v1163_v1 = vld [vmem:[#allocation6 + $0x148] sm:$0xff] }
  0x26   :  { %635 = vmatpush.bf16.msra.mxu1 %v1132_v25  ;;  %v1180_v63 = vld [vmem:[#allocation6 + $0x1d0] sm:$0xff]  ;;  %v1171_v2 = vld [vmem:[#allocation6 + $0x188] sm:$0xff]  ;;  %v1154_v4 = vld [vmem:[#allocation6 + $0x100] sm:$0xff] }
  0x27   :  { %648 = vmatpush.bf16.msra.mxu2 %v1140_v26  ;;  %v1179_v3 = vld [vmem:[#allocation6 + $0x1c8] sm:$0xff]  ;;  %v1162_v5 = vld [vmem:[#allocation6 + $0x140] sm:$0xff]  ;;  %v224_v11 = vld [vmem:[#allocation1 + $0x3f] sm:$0xff] }
  0x28   :  { %661 = vmatpush.bf16.msra.mxu3 %v1148_v27  ;;  %v1170_v6 = vld [vmem:[#allocation6 + $0x180] sm:$0xff]  ;;  %v223_v10 = vld [vmem:[#allocation1 + $0x36] sm:$0xff]  ;;  %v1193_v12 = vld [vmem:[#allocation8 + $0x38] sm:$0xff] }
  0x29   :  { %623 = vmatpush.bf16.msra.mxu0 %v1123_v28  ;;  %v1178_v7 = vld [vmem:[#allocation6 + $0x1c0] sm:$0xff]  ;;  %v1192_v13 = vld [vmem:[#allocation8 + $0x30] sm:$0xff]  ;;  %v1191_v14 = vld [vmem:[#allocation8 + $0x28] sm:$0xff] }
  0x2a   :  { %636 = vmatpush.bf16.msra.mxu1 %v1131_v29  ;;  %v221_v8 = vld [vmem:[#allocation1 + $0x24] sm:$0xff]  ;;  %v222_v9 = vld [vmem:[#allocation1 + $0x2d] sm:$0xff]  ;;  %v1188_v19 = vld [vmem:[#allocation8 + $0x10] sm:$0xff] }
  0x2b   :  { %649 = vmatpush.bf16.msra.mxu2 %v1139_v30  ;;  %v1190_v15 = vld [vmem:[#allocation8 + $0x20] sm:$0xff]  ;;  %v1189_v16 = vld [vmem:[#allocation8 + $0x18] sm:$0xff]  ;;  %v1187_v21 = vld [vmem:[#allocation8 + $0x8] sm:$0xff] }
  0x2c   :  { %662 = vmatpush.bf16.msra.mxu3 %v1147_v31  ;;  %v1186_v25 = vld [vmem:[#allocation8] sm:$0xff] }
  0x2d   :  { %624 = vmatpush.bf16.msra.mxu0 %v1122_v32 }
  0x2e   :  { %637 = vmatpush.bf16.msra.mxu1 %v1130_v33 }
  0x2f   :  { %650 = vmatpush.bf16.msra.mxu2 %v1138_v34 }
  0x30   :  { %663 = vmatpush.bf16.msra.mxu3 %v1146_v35  ;;  %625 = vmatmul.bf16.vlgmr.msra.gmra.mxu0 %v217_v42 }
  0x31   :  { %669 = vmatpush.bf16.msrb.mxu0 %v1161_v36  ;;  %638 = vmatmul.bf16.vlgmr.msra.gmra.mxu1 %v218_v45 }
  0x32   :  { %682 = vmatpush.bf16.msrb.mxu1 %v1169_v37  ;;  %651 = vmatmul.bf16.vlgmr.msra.gmra.mxu2 %v219_v41 }
  0x33   :  { %695 = vmatpush.bf16.msrb.mxu2 %v1177_v38  ;;  %664 = vmatmul.bf16.vlgmr.msra.gmra.mxu3 %v220_v44  ;;  %v1202_v38 = vld [vmem:[%s1364_s2] ss:$0 sm:$0xff] }
  0x34   :  { %708 = vmatpush.bf16.msrb.mxu3 %v1185_v39 }
  0x35   :  { %670 = vmatpush.bf16.msrb.mxu0 %v1160_v40 }
  0x36   :  { %683 = vmatpush.bf16.msrb.mxu1 %v1168_v43 }
  0x37   :  { %696 = vmatpush.bf16.msrb.mxu2 %v1176_v46 }
  0x38   :  { %709 = vmatpush.bf16.msrb.mxu3 %v1184_v47  ;;  %v1203_v47 = vld [vmem:[%s1366_s4] ss:$0 sm:$0xff] }
  0x39   :  { %671 = vmatpush.bf16.msrb.mxu0 %v1159_v48 }
  0x3a   :  { %684 = vmatpush.bf16.msrb.mxu1 %v1167_v49 }
  0x3b   :  { %697 = vmatpush.bf16.msrb.mxu2 %v1175_v50 }
  0x3c   :  { %710 = vmatpush.bf16.msrb.mxu3 %v1183_v51 }
  0x3d   :  { %672 = vmatpush.bf16.msrb.mxu0 %v1158_v52 }
  0x3e   :  { %685 = vmatpush.bf16.msrb.mxu1 %v1166_v53 }
  0x3f   :  { %698 = vmatpush.bf16.msrb.mxu2 %v1174_v54 }
  0x40   :  { %711 = vmatpush.bf16.msrb.mxu3 %v1182_v55 }
  0x41   :  { %673 = vmatpush.bf16.msrb.mxu0 %v1157_v56 }
  0x42   :  { %686 = vmatpush.bf16.msrb.mxu1 %v1165_v57 }
  0x43   :  { %699 = vmatpush.bf16.msrb.mxu2 %v1173_v58 }
  0x44   :  { %712 = vmatpush.bf16.msrb.mxu3 %v1181_v59 }
  0x45   :  { %674 = vmatpush.bf16.msrb.mxu0 %v1156_v60 }
  0x46   :  { %687 = vmatpush.bf16.msrb.mxu1 %v1164_v61 }
  0x47   :  { %700 = vmatpush.bf16.msrb.mxu2 %v1172_v62 }
  0x48   :  { %713 = vmatpush.bf16.msrb.mxu3 %v1180_v63 }
  0x49   :  { %675 = vmatpush.bf16.msrb.mxu0 %v1155_v0 }
  0x4a   :  { %688 = vmatpush.bf16.msrb.mxu1 %v1163_v1 }
  0x4b   :  { %701 = vmatpush.bf16.msrb.mxu2 %v1171_v2 }
  0x4c   :  { %714 = vmatpush.bf16.msrb.mxu3 %v1179_v3 }
  0x4d   :  { %676 = vmatpush.bf16.msrb.mxu0 %v1154_v4 }
  0x4e   :  { %689 = vmatpush.bf16.msrb.mxu1 %v1162_v5 }
  0x4f   :  { %702 = vmatpush.bf16.msrb.mxu2 %v1170_v6 }
  0x50   :  { %715 = vmatpush.bf16.msrb.mxu3 %v1178_v7  ;;  %677 = vmatmul.bf16.vlgmr.msrb.gmra.mxu0 %v221_v8 }
  0x51   :  { %690 = vmatmul.bf16.vlgmr.msrb.gmra.mxu1 %v222_v9  ;;  %802 = vmatpush.bf16.msra.mxu0 %v1193_v12 }
  0x52   :  { %703 = vmatmul.bf16.vlgmr.msrb.gmra.mxu2 %v223_v10 }
  0x53   :  { %716 = vmatmul.bf16.vlgmr.msrb.gmra.mxu3 %v224_v11 }
  0x55   :  { %803 = vmatpush.bf16.msra.mxu0 %v1192_v13 }
  0x59   :  { %804 = vmatpush.bf16.msra.mxu0 %v1191_v14 }
  0x5d   :  { %805 = vmatpush.bf16.msra.mxu0 %v1190_v15 }
  0x61   :  { %806 = vmatpush.bf16.msra.mxu0 %v1189_v16 }
  0x65   :  { %807 = vmatpush.bf16.msra.mxu0 %v1188_v19 }
  0x69   :  { %808 = vmatpush.bf16.msra.mxu0 %v1187_v21 }
  0x6d   :  { %809 = vmatpush.bf16.msra.mxu0 %v1186_v25 }
  0xad   :  { %v626_v17 = vpop.f32.mrf.mxu0 }
  0xae   :  { %v639_v18 = vpop.f32.mrf.mxu1 }
  0xaf   :  { %v640_v28 = vadd.f32 %v639_v18, %v626_v17 }
  0xb5   :  { %v652_v20 = vpop.f32.mrf.mxu2  ;;  %v628_v23 = vpop.f32.mrf.mxu0 }
  0xb6   :  { %v665_v22 = vpop.f32.mrf.mxu3  ;;  %v641_v24 = vpop.f32.mrf.mxu1  ;;  %v653_v29 = vadd.f32 %v652_v20, %v640_v28 }
  0xb8   :  { %v666_v30 = vadd.f32 %v665_v22, %v653_v29 }
  0xbd   :  { %v654_v26 = vpop.f32.mrf.mxu2 }
  0xbe   :  { %v667_v27 = vpop.f32.mrf.mxu3 }
  0xcd   :  { %v678_v31 = vpop.f32.mrf.mxu0 }
  0xce   :  { %v691_v32 = vpop.f32.mrf.mxu1  ;;  %v679_v33 = vadd.f32 %v678_v31, %v666_v30 }
  0xd0   :  { %v692_v34 = vadd.f32 %v691_v32, %v679_v33 }
  0xd5   :  { %v704_v35 = vpop.f32.mrf.mxu2  ;;  %v680_v39 = vpop.f32.mrf.mxu0 }
  0xd6   :  { %v717_v36 = vpop.f32.mrf.mxu3  ;;  %v705_v37 = vadd.f32 %v704_v35, %v692_v34  ;;  %v693_v40 = vpop.f32.mrf.mxu1 }
  0xd8   :  { %v718_v41 = vadd.f32 %v717_v36, %v705_v37 }
  0xda   :  { %v731_v42 = vadd.f32 %v1202_v38, %v718_v41 }
  0xdc   :  { %v732_v43 = vmax.f32 %v731_v42, 0.0 }
  0xdd   :  { %v706_v44 = vpop.f32.mrf.mxu2 }
  0xde   :  { %v719_v45 = vpop.f32.mrf.mxu3  ;;  %v733_v46 = vpack.c.bf16 %v732_v43, %v732_v43 }
  0xe0   :  { %810 = vmatmul.bf16.vlgmr.msra.gmra.mxu0 %v733_v46 }
 0x15d   :  { %v811_v48 = vpop.f32.mrf.mxu0 }
 0x15e   :  { %v812_v49 = vadd.f32 %v1203_v47, %v811_v48 }
 0x160   :  { %815 = vst [vmem:[#allocation9] sm:$0xff] %v812_v49 }
 0x161   :  { %826 = dma.vmem_to_hbm [thread:$0]  %s822_s14, 128, %s824_s17, [#allocation5]  }
 0x165   :  { %v813_v50 = vpop.f32.mrf.mxu0 }
 0x166   :  { %1304 = dma.done.wait [#allocation5], 128  }
 0x167   :  { %1305 = vsyncadd [#allocation5], 4294967168 }
 0x168   :  { %831 = vsyncpa [#allocation4], 1 }
 0x169   :  { %832 = vsyncpa [#allocation7], 1 }
 0x16a   :  { %833 = vsyncpa [#allocation5], 1 }

</bundles_post_ra>
